<compile_context>
chip_gen: v5e
topology: v5e:2x2
jax: 0.10.0
libtpu: 0.0.40
codegen_flags: <defaults>
</compile_context>

<pallas_src>
import functools

import jax
import jax.numpy as jnp
from jax.experimental import pallas as pl
from jax.experimental.pallas import tpu as pltpu


# ----------------------------------------------------------------------------
# Pallas kernel: whole encoder forward on VMEM-resident data.
# ----------------------------------------------------------------------------
def _fused_encoder_kernel(*refs, n_layers, kw_taps, img_w):
    """refs = [x, (w_wide_i, bias_i) * n_layers, w_head, b_head, out, scratch_0..].

    x         : (Rb, H*C0)                f32   rows = (n, w), lanes = (h, c)
    w_wide_i  : (KW*H*Cin_i, H*Cout_i)    bf16  KW taps stacked along K (kh, Cin folded)
    bias_i    : (1, H*Cout_i)             f32   (zeros for the rsconv2d layer)
    w_head    : (H*C_last, HEAD_PAD)      bf16  fused means|vars head, zero-padded to 128 lanes
    b_head    : (1, HEAD_PAD)             f32
    out       : (Rb, HEAD_PAD)            f32
    scratch_i : (Rb + base + P, H*Cin_i)  f32   VMEM staging buffer: activation rows at an
                                                aligned offset `base`, zero border rows so the
                                                KW shifted views are plain window loads.
    """
    x_ref = refs[0]
    layer_refs = refs[1:1 + 2 * n_layers]
    wh_ref = refs[1 + 2 * n_layers]
    bh_ref = refs[2 + 2 * n_layers]
    out_ref = refs[3 + 2 * n_layers]
    scratch_refs = refs[4 + 2 * n_layers:]

    pad = kw_taps // 2
    base = ((pad + 7) // 8) * 8            # sublane-aligned offset of the staged rows
    rows = x_ref.shape[0]

    # w-coordinate of every (n, w) row; used to zero taps that cross the image edge.
    col = jax.lax.broadcasted_iota(jnp.int32, (rows, 1), 0) % img_w

    a = x_ref[...]                                          # f32 (Rb, F_in)
    for li in range(n_layers):
        w_ref = layer_refs[2 * li]
        b_ref = layer_refs[2 * li + 1]
        s_ref = scratch_refs[li]

        # Stage this layer's input (zeroed border rows) so the KW shifted views
        # are static-offset window loads — no shift matmuls on the MXU.
        s_ref[...] = jnp.zeros_like(s_ref)
        s_ref[pl.ds(base, rows), :] = a

        taps = []
        for k in range(kw_taps):                            # static unroll over KW
            dx = k - pad
            win = s_ref[pl.ds(base + dx, rows), :]          # == input shifted by dx rows
            if dx != 0:
                keep = jnp.logical_and(col + dx >= 0, col + dx < img_w)
                win = jnp.where(keep, win, 0.0)             # zero taps across w-edges (VPU)
            taps.append(win)

        # One wide-K MXU matmul per layer: bf16 inputs, f32 accumulation.
        a_wide = jnp.concatenate(taps, axis=-1).astype(jnp.bfloat16)
        h = jnp.dot(a_wide, w_ref[...], preferred_element_type=jnp.float32)
        a = jnp.maximum(h + b_ref[...], 0.0)                # bias + ReLU in f32

    # Fused means|vars head: single matmul, lane-dense (128-wide) output store.
    out_ref[...] = (jnp.dot(a.astype(jnp.bfloat16), wh_ref[...],
                            preferred_element_type=jnp.float32) + bh_ref[...])


# ----------------------------------------------------------------------------
# One-time parameter re-packing (hoisted out of the per-call forward).
# ----------------------------------------------------------------------------
def _hanning(m):
    if m == 1:
        return jnp.ones((1,), jnp.float32)
    n = jnp.arange(m, dtype=jnp.float32)
    return 0.5 - 0.5 * jnp.cos(2.0 * jnp.pi * n / (m - 1))


def _rsconv_weights(rates, scales, kernel):
    """rsconv2d weight synthesis: sin(rates*t + scales*f) * hanning window (OIHW)."""
    KH, KW = kernel
    f = jnp.arange(KH, dtype=jnp.float32)                   # varies along kh
    t = jnp.arange(KW, dtype=jnp.float32)                   # varies along kw
    ww = jnp.outer(_hanning(KH), _hanning(KW))              # (KH, KW)
    phase = (rates[:, :, None, None] * t[None, None, None, :]
             + scales[:, :, None, None] * f[None, None, :, None])
    return jnp.sin(phase) * ww[None, None, :, :]


def _band_matrices(w_oihw, H):
    """Per kw-tap: B[yi*Cin+ci, yo*Cout+co] = w[co, ci, yi-yo+KH//2, kw].

    NOTE: density is ~KH/H (structural zeros).  Fine at this (latency-bound)
    size; switch to kh-as-roll taps with dense Cin x Cout weights if H grows."""
    c_out, c_in, KH, KW = w_oihw.shape
    mats = []
    for kw in range(KW):
        m = jnp.zeros((H * c_in, H * c_out), jnp.float32)
        for kh in range(KH):
            dy = kh - KH // 2
            m = m + jnp.kron(jnp.eye(H, k=-dy, dtype=jnp.float32),
                             w_oihw[:, :, kh, kw].T)
        mats.append(m)
    return jnp.stack(mats)                                   # (KW, H*Cin, H*Cout)


def _head_rows(wm, c_last, H):
    """Conv1d(k=1) weight (bn, C*H) -> rows ordered (h*C + c) for our lane layout."""
    bn = wm.shape[0]
    return wm.reshape(bn, c_last, H).transpose(2, 1, 0).reshape(H * c_last, bn)


def prepare_params(params, *, kernel, input_h):
    """One-time weight re-packing; outputs feed straight into the pallas_call."""
    KH, KW = kernel
    if KH % 2 != 1 or KW % 2 != 1:
        raise ValueError("odd kernel sizes required for 'same' padding")
    H = input_h

    layers = []
    for (w_oihw, b) in params["convs"]:                      # regular Conv2d layers
        c_out = w_oihw.shape[0]
        band = _band_matrices(w_oihw, H)                     # (KW, H*Cin, H*Cout)
        w_wide = band.reshape(KW * band.shape[1], H * c_out)
        bias = jnp.tile(b, H).reshape(1, H * c_out)
        layers.append((w_wide.astype(jnp.bfloat16), bias.astype(jnp.float32)))

    w_rs = _rsconv_weights(params["rates"], params["scales"], kernel)
    c_last = w_rs.shape[0]
    band = _band_matrices(w_rs, H)
    layers.append((band.reshape(KW * band.shape[1], H * c_last).astype(jnp.bfloat16),
                   jnp.zeros((1, H * c_last), jnp.float32)))  # rsconv2d: no bias

    bn = params["wm"].shape[0]
    wh = jnp.concatenate([_head_rows(params["wm"], c_last, H),
                          _head_rows(params["wv"], c_last, H)], axis=1)  # (H*C_last, 2bn)
    bh = jnp.concatenate([params["bm"], params["bv"]])
    head_w = ((2 * bn + 127) // 128) * 128                   # lane-dense output width
    pad_cols = head_w - 2 * bn
    wh = jnp.pad(wh, ((0, 0), (0, pad_cols)))
    bh = jnp.pad(bh, (0, pad_cols)).reshape(1, head_w)

    return {"layers": tuple(layers),
            "w_head": wh.astype(jnp.bfloat16),
            "b_head": bh.astype(jnp.float32)}


# ----------------------------------------------------------------------------
# Forward pass (single pallas_call; only input layout work in the hot path).
# ----------------------------------------------------------------------------
def vae_cnn_modulation_encoder_forward(x, prepped, *, kernel, bn_size):
    """Returns (means, vars, w_change) like the PyTorch module."""
    N, C0, H, W = x.shape
    KW = kernel[1]
    P = KW // 2
    base = ((P + 7) // 8) * 8
    R = N * W

    layers = prepped["layers"]
    n_layers = len(layers)
    wh, bh = prepped["w_head"], prepped["b_head"]
    head_w = wh.shape[1]

    # lane-dense input layout: rows = (n, w), lanes = (h, c)
    x_mat = jnp.transpose(x, (0, 3, 2, 1)).reshape(R, H * C0).astype(jnp.float32)

    # Row-parallel grid so v7x's 2nd TensorCore is used at real batch sizes.
    # Blocks hold whole images (Rb is a multiple of W), so kw taps never need
    # rows from another block (edge taps there are masked).  At toy sizes the
    # per-step overhead dominates, so keep a single block.
    n_blocks = 2 if (R >= 512 and N % 2 == 0 and (R // 2) % 8 == 0) else 1
    Rb = R // n_blocks

    operands = [x_mat]
    for (w, b) in layers:
        operands += [w, b]
    operands += [wh, bh]

    def _bcast(arr):                      # whole-array operand, same block every step
        nd = arr.ndim
        return pl.BlockSpec(tuple(arr.shape), lambda g, _nd=nd: (0,) * _nd)

    in_specs = [pl.BlockSpec((Rb, H * C0), lambda g: (g, 0))]
    for (w, b) in layers:
        in_specs += [_bcast(w), _bcast(b)]
    in_specs += [_bcast(wh), _bcast(bh)]

    scratch_shapes = [pltpu.VMEM((Rb + base + P, int(w.shape[0]) // KW), jnp.float32)
                      for (w, _) in layers]

    out = pl.pallas_call(
        functools.partial(_fused_encoder_kernel, n_layers=n_layers,
                          kw_taps=KW, img_w=W),
        out_shape=jax.ShapeDtypeStruct((R, head_w), jnp.float32),
        grid=(n_blocks,),
        in_specs=in_specs,
        out_specs=pl.BlockSpec((Rb, head_w), lambda g: (g, 0)),
        scratch_shapes=scratch_shapes,
        compiler_params=pltpu.CompilerParams(
            dimension_semantics=("parallel",),
            vmem_limit_bytes=32 * 1024 * 1024),
    )(*operands)

    out3 = out[:, :2 * bn_size].reshape(N, W, 2 * bn_size)
    means = jnp.transpose(out3[:, :, :bn_size], (0, 2, 1))   # (N, bn, W)
    vars_ = jnp.transpose(out3[:, :, bn_size:], (0, 2, 1))   # (N, bn, W)
    return means, vars_, W


# ----------------------------------------------------------------------------
# References for the correctness checks.
# ----------------------------------------------------------------------------
def _reference_forward(x, params, kernel):
    """Pure-JAX f32 HIGHEST-precision reference of the module semantics."""
    KH, KW = kernel
    pad = ((KH // 2, KH // 2), (KW // 2, KW // 2))
    hi = jax.lax.Precision.HIGHEST
    a = x
    for (w, b) in params["convs"]:
        a = jax.lax.conv_general_dilated(
            a, w, (1, 1), pad, dimension_numbers=("NCHW", "OIHW", "NCHW"),
            precision=hi)
        a = jnp.maximum(a + b[None, :, None, None], 0.0)
    w_rs = _rsconv_weights(params["rates"], params["scales"], kernel)
    a = jax.lax.conv_general_dilated(
        a, w_rs, (1, 1), pad, dimension_numbers=("NCHW", "OIHW", "NCHW"),
        precision=hi)
    a = jnp.maximum(a, 0.0)
    N, C, H, W = a.shape
    v = a.reshape(N, C * H, W)
    means = (jnp.einsum("bf,nfw->nbw", params["wm"], v, precision=hi)
             + params["bm"][None, :, None])
    vars_ = (jnp.einsum("bf,nfw->nbw", params["wv"], v, precision=hi)
             + params["bv"][None, :, None])
    return means, vars_, W


def _emulate_kernel_numerics(x_mat, prepped, *, kernel, img_w):
    """Plain-JAX replica of the kernel's exact arithmetic (bf16 MXU inputs,
    f32 accumulation).  Used for a tight check of the Pallas lowering itself."""
    KW = kernel[1]
    P = KW // 2
    R = x_mat.shape[0]
    col = (jnp.arange(R) % img_w)[:, None]
    a = x_mat
    for (w, b) in prepped["layers"]:
        taps = []
        for k in range(KW):
            dx = k - P
            win = jnp.roll(a, -dx, axis=0)
            if dx != 0:
                keep = jnp.logical_and(col + dx >= 0, col + dx < img_w)
                win = jnp.where(keep, win, 0.0)
            taps.append(win)
        a_wide = jnp.concatenate(taps, axis=-1).astype(jnp.bfloat16)
        h = jnp.dot(a_wide, w, preferred_element_type=jnp.float32)
        a = jnp.maximum(h + b, 0.0)
    return (jnp.dot(a.astype(jnp.bfloat16), prepped["w_head"],
                    preferred_element_type=jnp.float32) + prepped["b_head"])


# ----------------------------------------------------------------------------
# Deterministic parameter init.
# ----------------------------------------------------------------------------
def init_params(key, in_channels, out_channels, kernel, input_h, bn_size):
    n_reg = len(in_channels) - 1
    keys = jax.random.split(key, 2 * n_reg + 6)
    convs = []
    for i in range(n_reg):
        cin, cout = in_channels[i], out_channels[i]
        fan_in = float(cin * kernel[0] * kernel[1])
        w = (jax.random.normal(keys[2 * i], (cout, cin, kernel[0], kernel[1]),
                               jnp.float32) / jnp.sqrt(fan_in))
        b = 0.01 * jax.random.normal(keys[2 * i + 1], (cout,), jnp.float32)
        convs.append((w, b))
    rates = jax.random.uniform(keys[-6], (out_channels[-1], in_channels[-1]),
                               jnp.float32)
    scales = 0.5 * jax.random.normal(keys[-5], (out_channels[-1], in_channels[-1]),
                                     jnp.float32)
    cnn_out_dim = out_channels[-1] * input_h
    wm = (jax.random.normal(keys[-4], (bn_size, cnn_out_dim), jnp.float32)
          / jnp.sqrt(float(cnn_out_dim)))
    bm = 0.01 * jax.random.normal(keys[-3], (bn_size,), jnp.float32)
    wv = (jax.random.normal(keys[-2], (bn_size, cnn_out_dim), jnp.float32)
          / jnp.sqrt(float(cnn_out_dim)))
    bv = 0.01 * jax.random.normal(keys[-1], (bn_size,), jnp.float32)
    return {"convs": convs, "rates": rates, "scales": scales,
            "wm": wm, "bm": bm, "wv": wv, "bv": bv}


if __name__ == "__main__":
    input_h = input_w = 16
    in_channels = [4, 8]
    out_channels = [8, 16]
    kernel = (3, 3)
    bn_size = 32
    N = 2

    key = jax.random.PRNGKey(0)
    kx, kp = jax.random.split(key)
    x = jax.random.normal(kx, (N, in_channels[0], input_h, input_w), jnp.float32)
    params = init_params(kp, in_channels, out_channels, kernel, input_h, bn_size)

    # One-time parameter re-packing, hoisted out of the per-call forward.
    prepped = prepare_params(params, kernel=kernel, input_h=input_h)

    fwd = jax.jit(functools.partial(vae_cnn_modulation_encoder_forward,
                                    kernel=kernel, bn_size=bn_size))
    means, vars_, w_change = fwd(x, prepped)
    jax.block_until_ready((means, vars_))

    assert means.shape == (N, bn_size, input_w)
    assert vars_.shape == (N, bn_size, input_w)
    assert int(w_change) == input_w

    # Check 1 (tight): kernel vs a plain-JAX replica of its exact numerics.
    # Residual differences come only from f32 accumulation order (and the
    # resulting occasional 1-ulp bf16 double rounding of intermediates).
    x_mat = jnp.transpose(x, (0, 3, 2, 1)).reshape(N * input_w,
                                                   input_h * in_channels[0])
    emu = _emulate_kernel_numerics(x_mat, prepped, kernel=kernel, img_w=input_w)
    emu = emu[:, :2 * bn_size].reshape(N, input_w, 2 * bn_size)
    emu_means = jnp.transpose(emu[:, :, :bn_size], (0, 2, 1))
    emu_vars = jnp.transpose(emu[:, :, bn_size:], (0, 2, 1))
    tight_err = max(float(jnp.max(jnp.abs(means - emu_means))),
                    float(jnp.max(jnp.abs(vars_ - emu_vars))))
    if not (tight_err < 2e-2):
        raise AssertionError(
            f"Pallas kernel mismatch vs same-numerics reference: "
            f"max|err|={tight_err}")

    # Check 2 (end-to-end): vs the full-f32 HIGHEST-precision reference.  The
    # bound is set by the bf16 MXU inputs (3 chained matmuls, a few x bf16 eps),
    # so it is expressed relative to the output scale.
    ref_means, ref_vars, _ = _reference_forward(x, params, kernel)
    abs_err = max(float(jnp.max(jnp.abs(means - ref_means))),
                  float(jnp.max(jnp.abs(vars_ - ref_vars))))
    scale = max(1.0, float(jnp.max(jnp.abs(ref_means))),
                float(jnp.max(jnp.abs(ref_vars))))
    if not (abs_err / scale < 3e-2):
        raise AssertionError(
            f"Pallas output mismatch vs f32 reference: max|err|={abs_err} "
            f"(output scale {scale})")

    print("KERNEL_OK")
</pallas_src>

<mosaic_0001>
module attributes {stable_mosaic.version = 11 : i64} {
  func.func @_fused_encoder_kernel(%arg0: i32, %arg1: memref<32x64xf32, #tpu.memory_space<vmem>>, %arg2: memref<192x128xbf16, #tpu.memory_space<vmem>>, %arg3: memref<1x128xf32, #tpu.memory_space<vmem>>, %arg4: memref<384x256xbf16, #tpu.memory_space<vmem>>, %arg5: memref<1x256xf32, #tpu.memory_space<vmem>>, %arg6: memref<256x128xbf16, #tpu.memory_space<vmem>>, %arg7: memref<1x128xf32, #tpu.memory_space<vmem>>, %arg8: memref<32x128xf32, #tpu.memory_space<vmem>>, %arg9: memref<41x64xf32, #tpu.memory_space<vmem>>, %arg10: memref<41x128xf32, #tpu.memory_space<vmem>>) attributes {dimension_semantics = [#tpu.dimension_semantics<parallel>], iteration_bounds = array<i64: 1>, scalar_prefetch = 0 : i64, scratch_operands = 2 : i64, tpu.core_type = #tpu.core_type<tc>, window_params = [{transform_indices = @transform_0, window_bounds = array<i64: 32, 64>}, {pipeline_mode = #tpu.pipeline_mode<synchronous>, transform_indices = @transform_1, window_bounds = array<i64: 192, 128>}, {pipeline_mode = #tpu.pipeline_mode<synchronous>, transform_indices = @transform_2, window_bounds = array<i64: 1, 128>}, {pipeline_mode = #tpu.pipeline_mode<synchronous>, transform_indices = @transform_3, window_bounds = array<i64: 384, 256>}, {pipeline_mode = #tpu.pipeline_mode<synchronous>, transform_indices = @transform_4, window_bounds = array<i64: 1, 256>}, {pipeline_mode = #tpu.pipeline_mode<synchronous>, transform_indices = @transform_5, window_bounds = array<i64: 256, 128>}, {pipeline_mode = #tpu.pipeline_mode<synchronous>, transform_indices = @transform_6, window_bounds = array<i64: 1, 128>}, {transform_indices = @transform_7, window_bounds = array<i64: 32, 128>}]} {
    %0 = tpu.iota {dimensions = array<i32: 0>} : vector<32x1xi32>
    %c16_i32 = arith.constant 16 : i32
    %c0_i32 = arith.constant 0 : i32
    %1 = arith.cmpi eq, %c16_i32, %c0_i32 : i32
    %c1_i32 = arith.constant 1 : i32
    %2 = arith.select %1, %c1_i32, %c16_i32 : i32
    %3 = vector.broadcast %2 : i32 to vector<32x1xi32>
    %4 = arith.remsi %0, %3 : vector<32x1xi32>
    %c0_i32_0 = arith.constant 0 : i32
    %5 = vector.broadcast %c0_i32_0 : i32 to vector<32x1xi32>
    %6 = arith.cmpi ne, %4, %5 : vector<32x1xi32>
    %c0_i32_1 = arith.constant 0 : i32
    %7 = vector.broadcast %c0_i32_1 : i32 to vector<32x1xi32>
    %8 = arith.cmpi slt, %4, %7 : vector<32x1xi32>
    %c0_i32_2 = arith.constant 0 : i32
    %9 = arith.cmpi slt, %2, %c0_i32_2 : i32
    %10 = vector.broadcast %9 : i1 to vector<32x1xi1>
    %11 = vector.broadcast %10 : vector<32x1xi1> to vector<32x1xi1>
    %12 = arith.xori %8, %11 : vector<32x1xi1>
    %13 = arith.andi %12, %6 : vector<32x1xi1>
    %14 = vector.broadcast %2 : i32 to vector<32x1xi32>
    %15 = arith.addi %4, %14 : vector<32x1xi32>
    %16 = arith.select %13, %15, %4 : vector<32x1xi1>, vector<32x1xi32>
    %c0 = arith.constant 0 : index
    %c0_3 = arith.constant 0 : index
    %17 = vector.load %arg1[%c0, %c0_3] : memref<32x64xf32, #tpu.memory_space<vmem>>, vector<32x64xf32>
    %cst = arith.constant 0.000000e+00 : f32
    %18 = vector.broadcast %cst : f32 to vector<41x64xf32>
    %c0_4 = arith.constant 0 : index
    %c0_5 = arith.constant 0 : index
    %19 = vector.load %arg9[%c0_4, %c0_5] : memref<41x64xf32, #tpu.memory_space<vmem>>, vector<41x64xf32>
    tpu.vector_store %arg9[%c0_4, %c0_5], %18 {strides = array<i32>} : memref<41x64xf32, #tpu.memory_space<vmem>>, vector<41x64xf32>,
    %c8 = arith.constant 8 : index
    %c0_6 = arith.constant 0 : index
    %20 = vector.load %arg9[%c8, %c0_6] : memref<41x64xf32, #tpu.memory_space<vmem>>, vector<32x64xf32>
    tpu.vector_store %arg9[%c8, %c0_6], %17 {strides = array<i32>} : memref<41x64xf32, #tpu.memory_space<vmem>>, vector<32x64xf32>,
    %c7 = arith.constant 7 : index
    %c0_7 = arith.constant 0 : index
    %21 = vector.load %arg9[%c7, %c0_7] : memref<41x64xf32, #tpu.memory_space<vmem>>, vector<32x64xf32>
    %c-1_i32 = arith.constant -1 : i32
    %22 = vector.broadcast %c-1_i32 : i32 to vector<32x1xi32>
    %23 = arith.addi %16, %22 : vector<32x1xi32>
    %c0_i32_8 = arith.constant 0 : i32
    %24 = vector.broadcast %c0_i32_8 : i32 to vector<32x1xi32>
    %25 = arith.cmpi sge, %23, %24 : vector<32x1xi32>
    %c-1_i32_9 = arith.constant -1 : i32
    %26 = vector.broadcast %c-1_i32_9 : i32 to vector<32x1xi32>
    %27 = arith.addi %16, %26 : vector<32x1xi32>
    %c16_i32_10 = arith.constant 16 : i32
    %28 = vector.broadcast %c16_i32_10 : i32 to vector<32x1xi32>
    %29 = arith.cmpi slt, %27, %28 : vector<32x1xi32>
    %30 = arith.andi %25, %29 : vector<32x1xi1>
    %cst_11 = arith.constant 0.000000e+00 : f32
    %31 = vector.shape_cast %30 : vector<32x1xi1> to vector<32x1xi1>
    %32 = vector.broadcast %31 : vector<32x1xi1> to vector<32x64xi1>
    %33 = vector.broadcast %cst_11 : f32 to vector<32x64xf32>
    %34 = arith.select %32, %21, %33 : vector<32x64xi1>, vector<32x64xf32>
    %c8_12 = arith.constant 8 : index
    %c0_13 = arith.constant 0 : index
    %35 = vector.load %arg9[%c8_12, %c0_13] : memref<41x64xf32, #tpu.memory_space<vmem>>, vector<32x64xf32>
    %c9 = arith.constant 9 : index
    %c0_14 = arith.constant 0 : index
    %36 = vector.load %arg9[%c9, %c0_14] : memref<41x64xf32, #tpu.memory_space<vmem>>, vector<32x64xf32>
    %c1_i32_15 = arith.constant 1 : i32
    %37 = vector.broadcast %c1_i32_15 : i32 to vector<32x1xi32>
    %38 = arith.addi %16, %37 : vector<32x1xi32>
    %c0_i32_16 = arith.constant 0 : i32
    %39 = vector.broadcast %c0_i32_16 : i32 to vector<32x1xi32>
    %40 = arith.cmpi sge, %38, %39 : vector<32x1xi32>
    %c1_i32_17 = arith.constant 1 : i32
    %41 = vector.broadcast %c1_i32_17 : i32 to vector<32x1xi32>
    %42 = arith.addi %16, %41 : vector<32x1xi32>
    %c16_i32_18 = arith.constant 16 : i32
    %43 = vector.broadcast %c16_i32_18 : i32 to vector<32x1xi32>
    %44 = arith.cmpi slt, %42, %43 : vector<32x1xi32>
    %45 = arith.andi %40, %44 : vector<32x1xi1>
    %cst_19 = arith.constant 0.000000e+00 : f32
    %46 = vector.shape_cast %45 : vector<32x1xi1> to vector<32x1xi1>
    %47 = vector.broadcast %46 : vector<32x1xi1> to vector<32x64xi1>
    %48 = vector.broadcast %cst_19 : f32 to vector<32x64xf32>
    %49 = arith.select %47, %36, %48 : vector<32x64xi1>, vector<32x64xf32>
    %50 = tpu.concatenate %34, %35, %49 in 1 : vector<32x64xf32>, vector<32x64xf32>, vector<32x64xf32> -> vector<32x192xf32>
    %51 = arith.truncf %50 : vector<32x192xf32> to vector<32x192xbf16>
    %c0_20 = arith.constant 0 : index
    %c0_21 = arith.constant 0 : index
    %52 = vector.load %arg2[%c0_20, %c0_21] : memref<192x128xbf16, #tpu.memory_space<vmem>>, vector<192x128xbf16>
    %cst_22 = arith.constant dense<0.000000e+00> : vector<32x128xf32>
    %53 = tpu.matmul %51, %52, %cst_22 {dimension_numbers = #tpu.dot_dimension_numbers<[1], [0], [0], [1], [0, 0, 1, 1], [], []>} : vector<32x192xbf16>, vector<192x128xbf16>, vector<32x128xf32> -> vector<32x128xf32>
    %c0_23 = arith.constant 0 : index
    %c0_24 = arith.constant 0 : index
    %54 = vector.load %arg3[%c0_23, %c0_24] : memref<1x128xf32, #tpu.memory_space<vmem>>, vector<1x128xf32>
    %55 = vector.broadcast %54 : vector<1x128xf32> to vector<32x128xf32>
    %56 = arith.addf %53, %55 : vector<32x128xf32>
    %cst_25 = arith.constant 0.000000e+00 : f32
    %57 = vector.broadcast %cst_25 : f32 to vector<32x128xf32>
    %58 = arith.maximumf %56, %57 : vector<32x128xf32>
    %cst_26 = arith.constant 0.000000e+00 : f32
    %59 = vector.broadcast %cst_26 : f32 to vector<41x128xf32>
    %c0_27 = arith.constant 0 : index
    %c0_28 = arith.constant 0 : index
    %60 = vector.load %arg10[%c0_27, %c0_28] : memref<41x128xf32, #tpu.memory_space<vmem>>, vector<41x128xf32>
    tpu.vector_store %arg10[%c0_27, %c0_28], %59 {strides = array<i32>} : memref<41x128xf32, #tpu.memory_space<vmem>>, vector<41x128xf32>,
    %c8_29 = arith.constant 8 : index
    %c0_30 = arith.constant 0 : index
    %61 = vector.load %arg10[%c8_29, %c0_30] : memref<41x128xf32, #tpu.memory_space<vmem>>, vector<32x128xf32>
    tpu.vector_store %arg10[%c8_29, %c0_30], %58 {strides = array<i32>} : memref<41x128xf32, #tpu.memory_space<vmem>>, vector<32x128xf32>,
    %c7_31 = arith.constant 7 : index
    %c0_32 = arith.constant 0 : index
    %62 = vector.load %arg10[%c7_31, %c0_32] : memref<41x128xf32, #tpu.memory_space<vmem>>, vector<32x128xf32>
    %c-1_i32_33 = arith.constant -1 : i32
    %63 = vector.broadcast %c-1_i32_33 : i32 to vector<32x1xi32>
    %64 = arith.addi %16, %63 : vector<32x1xi32>
    %c0_i32_34 = arith.constant 0 : i32
    %65 = vector.broadcast %c0_i32_34 : i32 to vector<32x1xi32>
    %66 = arith.cmpi sge, %64, %65 : vector<32x1xi32>
    %c-1_i32_35 = arith.constant -1 : i32
    %67 = vector.broadcast %c-1_i32_35 : i32 to vector<32x1xi32>
    %68 = arith.addi %16, %67 : vector<32x1xi32>
    %c16_i32_36 = arith.constant 16 : i32
    %69 = vector.broadcast %c16_i32_36 : i32 to vector<32x1xi32>
    %70 = arith.cmpi slt, %68, %69 : vector<32x1xi32>
    %71 = arith.andi %66, %70 : vector<32x1xi1>
    %cst_37 = arith.constant 0.000000e+00 : f32
    %72 = vector.shape_cast %71 : vector<32x1xi1> to vector<32x1xi1>
    %73 = vector.broadcast %72 : vector<32x1xi1> to vector<32x128xi1>
    %74 = vector.broadcast %cst_37 : f32 to vector<32x128xf32>
    %75 = arith.select %73, %62, %74 : vector<32x128xi1>, vector<32x128xf32>
    %c8_38 = arith.constant 8 : index
    %c0_39 = arith.constant 0 : index
    %76 = vector.load %arg10[%c8_38, %c0_39] : memref<41x128xf32, #tpu.memory_space<vmem>>, vector<32x128xf32>
    %c9_40 = arith.constant 9 : index
    %c0_41 = arith.constant 0 : index
    %77 = vector.load %arg10[%c9_40, %c0_41] : memref<41x128xf32, #tpu.memory_space<vmem>>, vector<32x128xf32>
    %c1_i32_42 = arith.constant 1 : i32
    %78 = vector.broadcast %c1_i32_42 : i32 to vector<32x1xi32>
    %79 = arith.addi %16, %78 : vector<32x1xi32>
    %c0_i32_43 = arith.constant 0 : i32
    %80 = vector.broadcast %c0_i32_43 : i32 to vector<32x1xi32>
    %81 = arith.cmpi sge, %79, %80 : vector<32x1xi32>
    %c1_i32_44 = arith.constant 1 : i32
    %82 = vector.broadcast %c1_i32_44 : i32 to vector<32x1xi32>
    %83 = arith.addi %16, %82 : vector<32x1xi32>
    %c16_i32_45 = arith.constant 16 : i32
    %84 = vector.broadcast %c16_i32_45 : i32 to vector<32x1xi32>
    %85 = arith.cmpi slt, %83, %84 : vector<32x1xi32>
    %86 = arith.andi %81, %85 : vector<32x1xi1>
    %cst_46 = arith.constant 0.000000e+00 : f32
    %87 = vector.shape_cast %86 : vector<32x1xi1> to vector<32x1xi1>
    %88 = vector.broadcast %87 : vector<32x1xi1> to vector<32x128xi1>
    %89 = vector.broadcast %cst_46 : f32 to vector<32x128xf32>
    %90 = arith.select %88, %77, %89 : vector<32x128xi1>, vector<32x128xf32>
    %91 = tpu.concatenate %75, %76, %90 in 1 : vector<32x128xf32>, vector<32x128xf32>, vector<32x128xf32> -> vector<32x384xf32>
    %92 = arith.truncf %91 : vector<32x384xf32> to vector<32x384xbf16>
    %c0_47 = arith.constant 0 : index
    %c0_48 = arith.constant 0 : index
    %93 = vector.load %arg4[%c0_47, %c0_48] : memref<384x256xbf16, #tpu.memory_space<vmem>>, vector<384x256xbf16>
    %cst_49 = arith.constant dense<0.000000e+00> : vector<32x256xf32>
    %94 = tpu.matmul %92, %93, %cst_49 {dimension_numbers = #tpu.dot_dimension_numbers<[1], [0], [0], [1], [0, 0, 1, 1], [], []>} : vector<32x384xbf16>, vector<384x256xbf16>, vector<32x256xf32> -> vector<32x256xf32>
    %c0_50 = arith.constant 0 : index
    %c0_51 = arith.constant 0 : index
    %95 = vector.load %arg5[%c0_50, %c0_51] : memref<1x256xf32, #tpu.memory_space<vmem>>, vector<1x256xf32>
    %96 = vector.broadcast %95 : vector<1x256xf32> to vector<32x256xf32>
    %97 = arith.addf %94, %96 : vector<32x256xf32>
    %cst_52 = arith.constant 0.000000e+00 : f32
    %98 = vector.broadcast %cst_52 : f32 to vector<32x256xf32>
    %99 = arith.maximumf %97, %98 : vector<32x256xf32>
    %100 = arith.truncf %99 : vector<32x256xf32> to vector<32x256xbf16>
    %c0_53 = arith.constant 0 : index
    %c0_54 = arith.constant 0 : index
    %101 = vector.load %arg6[%c0_53, %c0_54] : memref<256x128xbf16, #tpu.memory_space<vmem>>, vector<256x128xbf16>
    %cst_55 = arith.constant dense<0.000000e+00> : vector<32x128xf32>
    %102 = tpu.matmul %100, %101, %cst_55 {dimension_numbers = #tpu.dot_dimension_numbers<[1], [0], [0], [1], [0, 0, 1, 1], [], []>} : vector<32x256xbf16>, vector<256x128xbf16>, vector<32x128xf32> -> vector<32x128xf32>
    %c0_56 = arith.constant 0 : index
    %c0_57 = arith.constant 0 : index
    %103 = vector.load %arg7[%c0_56, %c0_57] : memref<1x128xf32, #tpu.memory_space<vmem>>, vector<1x128xf32>
    %104 = vector.broadcast %103 : vector<1x128xf32> to vector<32x128xf32>
    %105 = arith.addf %102, %104 : vector<32x128xf32>
    %c0_58 = arith.constant 0 : index
    %c0_59 = arith.constant 0 : index
    %106 = vector.load %arg8[%c0_58, %c0_59] : memref<32x128xf32, #tpu.memory_space<vmem>>, vector<32x128xf32>
    tpu.vector_store %arg8[%c0_58, %c0_59], %105 {strides = array<i32>} : memref<32x128xf32, #tpu.memory_space<vmem>>, vector<32x128xf32>,
    return
  }
  func.func @transform_0(%arg0: i32) -> (i32, i32) {
    %c0_i32 = arith.constant 0 : i32
    %c0_i32_0 = arith.constant 0 : i32
    return %arg0, %c0_i32 : i32, i32
  }
  func.func @transform_1(%arg0: i32) -> (i32, i32) {
    %c0_i32 = arith.constant 0 : i32
    %c0_i32_0 = arith.constant 0 : i32
    %c0_i32_1 = arith.constant 0 : i32
    return %c0_i32, %c0_i32_0 : i32, i32
  }
  func.func @transform_2(%arg0: i32) -> (i32, i32) {
    %c0_i32 = arith.constant 0 : i32
    %c0_i32_0 = arith.constant 0 : i32
    %c0_i32_1 = arith.constant 0 : i32
    return %c0_i32, %c0_i32_0 : i32, i32
  }
  func.func @transform_3(%arg0: i32) -> (i32, i32) {
    %c0_i32 = arith.constant 0 : i32
    %c0_i32_0 = arith.constant 0 : i32
    %c0_i32_1 = arith.constant 0 : i32
    return %c0_i32, %c0_i32_0 : i32, i32
  }
  func.func @transform_4(%arg0: i32) -> (i32, i32) {
    %c0_i32 = arith.constant 0 : i32
    %c0_i32_0 = arith.constant 0 : i32
    %c0_i32_1 = arith.constant 0 : i32
    return %c0_i32, %c0_i32_0 : i32, i32
  }
  func.func @transform_5(%arg0: i32) -> (i32, i32) {
    %c0_i32 = arith.constant 0 : i32
    %c0_i32_0 = arith.constant 0 : i32
    %c0_i32_1 = arith.constant 0 : i32
    return %c0_i32, %c0_i32_0 : i32, i32
  }
  func.func @transform_6(%arg0: i32) -> (i32, i32) {
    %c0_i32 = arith.constant 0 : i32
    %c0_i32_0 = arith.constant 0 : i32
    %c0_i32_1 = arith.constant 0 : i32
    return %c0_i32, %c0_i32_0 : i32, i32
  }
  func.func @transform_7(%arg0: i32) -> (i32, i32) {
    %c0_i32 = arith.constant 0 : i32
    %c0_i32_0 = arith.constant 0 : i32
    return %arg0, %c0_i32 : i32, i32
  }
}

</mosaic_0001>

<bundles_post_ra>
// kernel: vae_cnn_modulation_encoder_forward.1
= control target key start
LH: loop header
LB: loop body
LE: loop exit
PB: predicated region body
PF: predicated region fallthrough
CT: control target
= control target key end

     0   :  { %12 = vsyncpa [#allocation5], 0  ;;  %s1444_s27 = smov [#allocation4]   ;;  %s1445_s29 = smov 64   ;;  %s1932_s0 = inlined_call_operand.vmem [shape: f32[32,64], index: 0, kind: input, shape index: {}]   ;;  %s1933_s1 = inlined_call_operand.hbm [shape: bf16[192,128], index: 1, kind: input, shape index: {}]   ;;  %s1934_s2 = inlined_call_operand.vmem [shape: f32[1,128], index: 2, kind: input, shape index: {}]   ;;  %s1935_s3 = inlined_call_operand.vmem [shape: bf16[384,256], index: 3, kind: input, shape index: {}]   ;;  %s1936_s4 = inlined_call_operand.vmem [shape: f32[1,256], index: 4, kind: input, shape index: {}]   ;;  %s1937_s5 = inlined_call_operand.vmem [shape: bf16[256,128], index: 5, kind: input, shape index: {}]   ;;  %s1938_s6 = inlined_call_operand.vmem [shape: f32[1,128], index: 6, kind: input, shape index: {}]   ;;  %s1939_s7 = inlined_call_operand.vmem [shape: f32[32,128], index: 7, kind: output, shape index: {}]  }
   0x1   :  { %s19_s26 = sshll.u32 %s1933_s1, 4  ;;  %s21_s28 = sshll.u32 %s1444_s27, 4  ;;  %s20_s26 = int_to_ptr.hbm [resolvable:$true] %s19_s26  ;;  %s22_s28 = int_to_ptr.vmem [resolvable:$true] %s21_s28 }
   0x2   :  { %s1446_s30 = smov 4  }
   0x3   :  { %27 = dma.hbm_to_vmem [thread:$0]  %s20_s26, 1536, %s22_s28, [#allocation5], %s1445_s29, %s1445_s29, %s1446_s30  }
   0x4   :  { %1442 = dma.done.wait [#allocation5], 1536  }
   0x5   :  { %1443 = vsyncadd [#allocation5], 4294965760  ;;  %vm100_vm0 = vcmask 523264   ;;  %v1447_v0 = vmov 0.0   ;;  %v43_v1 = vlaneseq  ;;  %v96_v4 = vld [vmem:[%s1932_s0] sm:$0xff]  ;;  %v97_v5 = vld [vmem:[%s1932_s0 + $0x8] sm:$0xff] }
   0x6   :  { %102 = vst.msk [vmem:[#allocation2 + $0x8] sm:$0xff] %vm100_vm0, %v1447_v0  ;;  %v98_v6 = vld [vmem:[%s1932_s0 + $0x10] sm:$0xff]  ;;  %v99_v7 = vld [vmem:[%s1932_s0 + $0x18] sm:$0xff]  ;;  %v1322_v14 = vld [vmem:[#allocation4 + $0x28] sm:$0xff]  ;;  %vm106_vm2 = vcmask 516096   ;;  %vm1448_vm6 = vmmov 1  }
   0x7   :  { %103 = vst.msk [vmem:[#allocation2 + $0x10] sm:$0xff] %vm100_vm0, %v1447_v0  ;;  %v1498_v2 = vshrl.u32 %v43_v1, 7  ;;  %v1324_v8 = vld [vmem:[#allocation4 + $0x38] sm:$0xff]  ;;  %v1323_v11 = vld [vmem:[#allocation4 + $0x30] sm:$0xff]  ;;  %v1326_v16 = vld [vmem:[#allocation4 + $0x48] sm:$0xff] }
   0x8   :  { %101 = vst.msk [vmem:[#allocation2] sm:$0xff] %vm100_vm0, %v1447_v0  ;;  %v1328_v10 = vld [vmem:[#allocation4 + $0x58] sm:$0xff]  ;;  %310 = vmatpush.bf16.msra.mxu0 %v1324_v8  ;;  %v1327_v12 = vld [vmem:[#allocation4 + $0x50] sm:$0xff]  ;;  %v1321_v20 = vld [vmem:[#allocation4 + $0x20] sm:$0xff] }
   0x9   :  { %104 = vst.msk [vmem:[#allocation2 + $0x18] sm:$0xff] %vm100_vm0, %v1447_v0  ;;  %v45_v3 = vadd.s32 8, %v1498_v2  ;;  %333 = vmatpush.bf16.msra.mxu1 %v1328_v10  ;;  %v1325_v21 = vld [vmem:[#allocation4 + $0x40] sm:$0xff]  ;;  %v1320_v26 = vld [vmem:[#allocation4 + $0x18] sm:$0xff]  ;;  %v1319_v29 = vld [vmem:[#allocation4 + $0x10] sm:$0xff]  ;;  %v47_v32 = vadd.s32 24, %v1498_v2 }
   0xa   :  { %105 = vst.msk [vmem:[#allocation2 + $0x20] sm:$0xff] %vm100_vm0, %v1447_v0  ;;  %v1318_v30 = vld [vmem:[#allocation4 + $0x8] sm:$0xff]  ;;  %v1317_v31 = vld [vmem:[#allocation4] sm:$0xff]  ;;  %v52_v39 = vand.u32 15, %v1498_v2  ;;  %v1095_v41 = vld [vmem:[%s1935_s3 + $0x70] sm:$0xf] }
   0xb   :  { %352 = vst [vmem:[#allocation3] sm:$0xff] %v1447_v0  ;;  %v59_v9 = vand.u32 15, %v45_v3  ;;  %v73_v33 = vand.u32 15, %v47_v32  ;;  %v1344_v42 = vld [vmem:[%s1935_s3 + $0x74] sm:$0xf0]  ;;  %v46_v60 = vadd.s32 16, %v1498_v2 }
   0xc   :  { %357 = vst [vmem:[#allocation3 + $0x28] sm:$0x1] %v1447_v0  ;;  %311 = vmatpush.bf16.msra.mxu0 %v1323_v11  ;;  %v1534_v40 = vadd.s32 4294967295, %v52_v39  ;;  %v1159_v43 = vld [vmem:[%s1935_s3 + $0xf0] sm:$0xf]  ;;  %v1096_v44 = vor.u32 %v1344_v42, %v1095_v41 }
   0xd   :  { %108 = vst.msk [vmem:[#allocation2 + $0x8] sm:$0xff] %vm100_vm0, %v96_v4  ;;  %v1518_v13 = vadd.s32 1, %v59_v9  ;;  %334 = vmatpush.bf16.msra.mxu1 %v1327_v12  ;;  %v1527_v34 = vadd.s32 1, %v73_v33  ;;  %v1360_v45 = vld [vmem:[%s1935_s3 + $0xf4] sm:$0xf0]  ;;  %v66_v3 = vand.u32 15, %v46_v60 }
   0xe   :  { %109 = vst.msk [vmem:[#allocation2 + $0x10] sm:$0xff] %vm100_vm0, %v97_v5  ;;  %v1343_v46 = vld [vmem:[%s1935_s3 + $0x74] sm:$0xf]  ;;  %v1097_v47 = vld [vmem:[%s1935_s3 + $0x78] sm:$0xf0]  ;;  %v1160_v48 = vor.u32 %v1360_v45, %v1159_v43  ;;  %682 = vmatpush.bf16.msra.mxu2 %v1096_v44  ;;  %vm120_vm4 = vcmp.ge.s32.totalorder %v1534_v40, 0 }
   0xf   :  { %110 = vst.msk [vmem:[#allocation2 + $0x18] sm:$0xff] %vm100_vm0, %v98_v6  ;;  %vm161_vm1 = vcmp.lt.s32.totalorder %v1518_v13, 16  ;;  %vm163_vm3 = vcmp.lt.s32.totalorder %v1527_v34, 16  ;;  %v1100_v49 = vor.u32 %v1343_v46, %v1097_v47  ;;  %v1087_v50 = vld [vmem:[%s1935_s3 + $0x60] sm:$0xf]  ;;  %vm1229_vm7 = vmpackc.low %vm1448_vm6, %vm120_vm4  ;;  %v1384_v13 = vld [vmem:[%s1937_s5 + $0x38] sm:$0xff] }
  0x10   :  { %111 = vst.msk [vmem:[#allocation2 + $0x20] sm:$0xff] %vm100_vm0, %v99_v7  ;;  %312 = vmatpush.bf16.msra.mxu0 %v1322_v14  ;;  %v1342_v51 = vld [vmem:[%s1935_s3 + $0x64] sm:$0xf0]  ;;  %v1151_v52 = vld [vmem:[%s1935_s3 + $0xe0] sm:$0xf]  ;;  %701 = vmatpush.bf16.msra.mxu3 %v1160_v48  ;;  %v1578_v7 = vadd.s32 4294967295, %v66_v3  ;;  %vm1852_vm8 = vmpackc.low %vm161_vm1, %vm1448_vm6 }
  0x11   :  { %335 = vmatpush.bf16.msra.mxu1 %v1326_v16  ;;  %107 = vst.msk [vmem:[#allocation2 + $0x28] sm:$0x1] %vm106_vm2, %v1447_v0  ;;  %v1088_v53 = vor.u32 %v1342_v51, %v1087_v50  ;;  %v1358_v54 = vld [vmem:[%s1935_s3 + $0xe4] sm:$0xf0]  ;;  %v1341_v55 = vld [vmem:[%s1935_s3 + $0x64] sm:$0xf]  ;;  %vm1238_vm10 = vmpackc.low %vm163_vm3, %vm1448_vm6 }
  0x12   :  { %v1089_v56 = vld [vmem:[%s1935_s3 + $0x68] sm:$0xf0]  ;;  %v1152_v57 = vor.u32 %v1358_v54, %v1151_v52  ;;  %vm122_vm5 = vcmp.ge.s32.totalorder %v1578_v7, 0  ;;  %v1127_v32 = vld [vmem:[%s1935_s3 + $0xb0] sm:$0xf]  ;;  %v1380_v34 = vld [vmem:[%s1937_s5 + $0x18] sm:$0xff] }
  0x13   :  { %v1092_v58 = vor.u32 %v1341_v55, %v1089_v56  ;;  %683 = vmatpush.bf16.msra.mxu2 %v1088_v53  ;;  %v1352_v33 = vld [vmem:[%s1935_s3 + $0xb4] sm:$0xf0]  ;;  %v1374_v41 = vld [vmem:[%s1935_s3 + $0x164] sm:$0xf0]  ;;  %v1337_v42 = vld [vmem:[%s1935_s3 + $0x44] sm:$0xf] }
  0x14   :  { %v144_v15 = vld [vmem:[#allocation2 + $0x8] sm:$0xff]  ;;  %313 = vmatpush.bf16.msra.mxu0 %v1321_v20  ;;  %702 = vmatpush.bf16.msra.mxu3 %v1152_v57  ;;  %v1135_v20 = vld [vmem:[%s1935_s3 + $0xc0] sm:$0xf]  ;;  %v1336_v50 = vld [vmem:[%s1935_s3 + $0x34] sm:$0xf0] }
  0x15   :  { %v145_v17 = vld [vmem:[#allocation2 + $0x10] sm:$0xff]  ;;  %336 = vmatpush.bf16.msra.mxu1 %v1325_v21  ;;  %v112_v59 = vld [vmem:[#allocation2 + $0x7] sm:$0xff]  ;;  %v1119_v46 = vld [vmem:[%s1935_s3 + $0xa0] sm:$0xf] }
  0x16   :  { %v1406_v18 = vpack.i.bf16 %v145_v17, %v144_v15  ;;  %v149_v19 = vld [vmem:[#allocation2 + $0x11] sm:$0xff]  ;;  %v148_v22 = vld [vmem:[#allocation2 + $0x9] sm:$0xff]  ;;  %v140_v63 = vsel %vm120_vm4, %v112_v59, 0.0  ;;  %v1065_v55 = vld [vmem:[%s1935_s3 + $0x38] sm:$0xf0] }
  0x17   :  { %v177_v23 = vsel %vm161_vm1, %v149_v19, 0.0  ;;  %v146_v24 = vld [vmem:[#allocation2 + $0x18] sm:$0xff]  ;;  %v147_v25 = vld [vmem:[#allocation2 + $0x20] sm:$0xff]  ;;  %v113_v62 = vld [vmem:[#allocation2 + $0xf] sm:$0xff] }
  0x18   :  { %1407 = vrot.lane.b32.xlu0 %v1406_v18, %s1445_s29  ;;  %v201_v27 = vpack.c.bf16 %v177_v23, %v148_v22  ;;  %v1411_v28 = vpack.i.bf16 %v147_v25, %v146_v24  ;;  %314 = vmatpush.bf16.msra.mxu0 %v1320_v26  ;;  %v150_v35 = vld [vmem:[#allocation2 + $0x19] sm:$0xff]  ;;  %v151_v36 = vld [vmem:[#allocation2 + $0x21] sm:$0xff]  ;;  %v1143_v17 = vld [vmem:[%s1935_s3 + $0xd0] sm:$0xf] }
  0x19   :  { %v179_v37 = vsel %vm163_vm3, %v151_v36, 0.0  ;;  %v114_v8 = vld [vmem:[#allocation2 + $0x17] sm:$0xff]  ;;  %v115_v11 = vld [vmem:[#allocation2 + $0x1f] sm:$0xff]  ;;  %v1354_v21 = vld [vmem:[%s1935_s3 + $0xc4] sm:$0xf0] }
  0x1a   :  { %1035 = vmatmul.msk.bf16.vlgmr.msra.gmra.mxu1 %vm100_vm0, %v201_v27  ;;  %v203_v38 = vpack.c.bf16 %v179_v37, %v150_v35  ;;  %v142_v12 = vsel %vm122_vm5, %v114_v8, 0.0  ;;  %v1356_v18 = vld [vmem:[%s1935_s3 + $0xd4] sm:$0xf0]  ;;  %v1136_v22 = vor.u32 %v1354_v21, %v1135_v20  ;;  %v1079_v23 = vld [vmem:[%s1935_s3 + $0x50] sm:$0xf]  ;;  %v1128_v35 = vor.u32 %v1352_v33, %v1127_v32  ;;  %vm1232_vm9 = vmpackc.low %vm1448_vm6, %vm122_vm5 }
  0x1b   :  { %v1144_v19 = vor.u32 %v1356_v18, %v1143_v17  ;;  %v1340_v24 = vld [vmem:[%s1935_s3 + $0x54] sm:$0xf0]  ;;  %v1223_v25 = vld [vmem:[%s1935_s3 + $0x170] sm:$0xf]  ;;  %v1071_v36 = vld [vmem:[%s1935_s3 + $0x40] sm:$0xf] }
  0x1c   :  { %315 = vmatpush.bf16.msra.mxu0 %v1319_v29  ;;  %v1080_v26 = vor.u32 %v1340_v24, %v1079_v23  ;;  %v1376_v27 = vld [vmem:[%s1935_s3 + $0x174] sm:$0xf0]  ;;  %v1081_v29 = vld [vmem:[%s1935_s3 + $0x58] sm:$0xf0]  ;;  %v1338_v37 = vld [vmem:[%s1935_s3 + $0x44] sm:$0xf0] }
  0x1d   :  { %703 = vmatpush.bf16.msra.mxu3 %v1144_v19  ;;  %v1072_v39 = vor.u32 %v1338_v37, %v1071_v36  ;;  %v1073_v43 = vld [vmem:[%s1935_s3 + $0x48] sm:$0xf0]  ;;  %v1350_v47 = vld [vmem:[%s1935_s3 + $0xa4] sm:$0xf0]  ;;  %v1207_v51 = vld [vmem:[%s1935_s3 + $0x150] sm:$0xf] }
  0x1e   :  { %684 = vmatpush.bf16.msra.mxu2 %v1080_v26  ;;  %v1076_v45 = vor.u32 %v1337_v42, %v1073_v43  ;;  %v1120_v48 = vor.u32 %v1350_v47, %v1119_v46  ;;  %v1372_v53 = vld [vmem:[%s1935_s3 + $0x154] sm:$0xf0]  ;;  %v1335_v54 = vld [vmem:[%s1935_s3 + $0x34] sm:$0xf]  ;;  %v1333_v3 = vld [vmem:[%s1935_s3 + $0x24] sm:$0xf] }
  0x1f   :  { %v1208_v56 = vor.u32 %v1372_v53, %v1207_v51  ;;  %v1068_v57 = vor.u32 %v1335_v54, %v1065_v55  ;;  %v1348_v59 = vld [vmem:[%s1935_s3 + $0x94] sm:$0xf0]  ;;  %v1346_v8 = vld [vmem:[%s1935_s3 + $0x84] sm:$0xf0]  ;;  %v1049_v17 = vld [vmem:[%s1935_s3 + $0x18] sm:$0xf0] }
  0x20   :  { %1412 = vrot.lane.b32.xlu0 %v1411_v28, %s1445_s29  ;;  %316 = vmatpush.bf16.msra.mxu0 %v1318_v30  ;;  %v1339_v28 = vld [vmem:[%s1935_s3 + $0x54] sm:$0xf]  ;;  %v1224_v30 = vor.u32 %v1376_v27, %v1223_v25  ;;  %v1225_v21 = vld [vmem:[%s1935_s3 + $0x178] sm:$0xf0]  ;;  %v1039_v23 = vld [vmem:[%s1935_s3] sm:$0xf] }
  0x21   :  { %704 = vmatpush.bf16.msra.mxu3 %v1136_v22  ;;  %v1375_v20 = vld [vmem:[%s1935_s3 + $0x174] sm:$0xf]  ;;  %v1330_v24 = vld [vmem:[%s1935_s3 + $0x4] sm:$0xf0]  ;;  %v1183_v25 = vld [vmem:[%s1935_s3 + $0x120] sm:$0xf] }
  0x22   :  { %720 = vmatpush.bf16.msrb.mxu1 %v1224_v30  ;;  %685 = vmatpush.bf16.msra.mxu2 %v1072_v39  ;;  %v1228_v22 = vor.u32 %v1375_v20, %v1225_v21  ;;  %v1040_v26 = vor.u32 %v1330_v24, %v1039_v23  ;;  %v1366_v27 = vld [vmem:[%s1935_s3 + $0x124] sm:$0xf0]  ;;  %v1373_v32 = vld [vmem:[%s1935_s3 + $0x164] sm:$0xf]  ;;  %v1217_v33 = vld [vmem:[%s1935_s3 + $0x168] sm:$0xf0] }
  0x23   :  { %v1184_v30 = vor.u32 %v1366_v27, %v1183_v25  ;;  %v1359_v36 = vld [vmem:[%s1935_s3 + $0xf4] sm:$0xf]  ;;  %v1161_v37 = vld [vmem:[%s1935_s3 + $0xf8] sm:$0xf0]  ;;  %v1175_v39 = vld [vmem:[%s1935_s3 + $0x110] sm:$0xf] }
  0x24   :  { %317 = vmatpush.bf16.msra.mxu0 %v1317_v31  ;;  %v1084_v31 = vor.u32 %v1339_v28, %v1081_v29  ;;  %v1329_v28 = vld [vmem:[%s1935_s3 + $0x4] sm:$0xf]  ;;  %v1041_v29 = vld [vmem:[%s1935_s3 + $0x8] sm:$0xf0]  ;;  %v1371_v43 = vld [vmem:[%s1935_s3 + $0x154] sm:$0xf] }
  0x25   :  { %705 = vmatpush.bf16.msra.mxu3 %v1128_v35  ;;  %v1220_v35 = vor.u32 %v1373_v32, %v1217_v33  ;;  %v1357_v46 = vld [vmem:[%s1935_s3 + $0xe4] sm:$0xf]  ;;  %v1153_v47 = vld [vmem:[%s1935_s3 + $0xe8] sm:$0xf0]  ;;  %v1362_v51 = vld [vmem:[%s1935_s3 + $0x104] sm:$0xf0] }
  0x26   :  { %v1201_v53 = vld [vmem:[%s1935_s3 + $0x148] sm:$0xf0]  ;;  %v1780_v54 = vld [vmem:[%s1934_s2] ss:$0 sm:$0xff]  ;;  %v1361_v24 = vld [vmem:[%s1935_s3 + $0x104] sm:$0xf] }
  0x27   :  { %v1121_v20 = vld [vmem:[%s1935_s3 + $0xa8] sm:$0xf0] }
  0x28   :  { %739 = vmatpush.bf16.msrb.mxu0 %v1100_v49  ;;  %v1063_v49 = vld [vmem:[%s1935_s3 + $0x30] sm:$0xf]  ;;  %v1169_v25 = vld [vmem:[%s1935_s3 + $0x108] sm:$0xf0] }
  0x29   :  { %v1064_v52 = vor.u32 %v1336_v50, %v1063_v49  ;;  %706 = vmatpush.bf16.msra.mxu3 %v1120_v48  ;;  %v1167_v48 = vld [vmem:[%s1935_s3 + $0x100] sm:$0xf]  ;;  %v1156_v50 = vor.u32 %v1357_v46, %v1153_v47 }
  0x2a   :  { %1036 = vmatmul.msk.bf16.gmra.mxu1 %vm100_vm0, %v203_v38  ;;  %v1215_v38 = vld [vmem:[%s1935_s3 + $0x160] sm:$0xf]  ;;  %v1168_v55 = vor.u32 %v1362_v51, %v1167_v48 }
  0x2b   :  { %v1216_v44 = vor.u32 %v1374_v41, %v1215_v38  ;;  %686 = vmatpush.bf16.msra.mxu2 %v1064_v52  ;;  %v1164_v38 = vor.u32 %v1359_v36, %v1161_v37  ;;  %v1364_v41 = vld [vmem:[%s1935_s3 + $0x114] sm:$0xf0]  ;;  %v1369_v52 = vld [vmem:[%s1935_s3 + $0x144] sm:$0xf]  ;;  %v1105_v37 = vld [vmem:[%s1935_s3 + $0x88] sm:$0xf0] }
  0x2c   :  { %740 = vmatpush.bf16.msrb.mxu0 %v1092_v58  ;;  %v1111_v58 = vld [vmem:[%s1935_s3 + $0x90] sm:$0xf]  ;;  %v1176_v42 = vor.u32 %v1364_v41, %v1175_v39  ;;  %v1345_v36 = vld [vmem:[%s1935_s3 + $0x84] sm:$0xf] }
  0x2d   :  { %721 = vmatpush.bf16.msrb.mxu1 %v1216_v44  ;;  %v1112_v60 = vor.u32 %v1348_v59, %v1111_v58  ;;  %v1209_v44 = vld [vmem:[%s1935_s3 + $0x158] sm:$0xf0] }
  0x2e   :  { %v1145_v58 = vld [vmem:[%s1935_s3 + $0xd8] sm:$0xf0] }
  0x2f   :  { %707 = vmatpush.bf16.msra.mxu3 %v1112_v60 }
  0x30   :  { %741 = vmatpush.bf16.msrb.mxu0 %v1084_v31  ;;  %v1044_v31 = vor.u32 %v1329_v28, %v1041_v29  ;;  %v1347_v29 = vld [vmem:[%s1935_s3 + $0x94] sm:$0xf] }
  0x31   :  { %722 = vmatpush.bf16.msrb.mxu1 %v1208_v56  ;;  %v1204_v56 = vor.u32 %v1369_v52, %v1201_v53 }
  0x34   :  { %742 = vmatpush.bf16.msrb.mxu0 %v1076_v45  ;;  %v1212_v45 = vor.u32 %v1371_v43, %v1209_v44 }
  0x38   :  { %743 = vmatpush.bf16.msrb.mxu0 %v1068_v57  ;;  %v1355_v57 = vld [vmem:[%s1935_s3 + $0xd4] sm:$0xf] }
  0x39   :  { %v1148_v60 = vor.u32 %v1355_v57, %v1145_v58  ;;  %v1383_v57 = vld [vmem:[%s1937_s5 + $0x30] sm:$0xff] }
  0x8a   :  { %v1408_v61 = vpop.permute.xlu0 %1407 }
  0x8b   :  { %v1410_v0 = vunpack.i.h.bf16 %v1408_v61  ;;  %v1409_v1 = vunpack.i.l.bf16 %v1408_v61  ;;  %v1055_v61 = vld [vmem:[%s1935_s3 + $0x20] sm:$0xf] }
  0x8d   :  { %v196_v4 = vsel %vm100_vm0, %v140_v63, %v1409_v1  ;;  %v197_v5 = vsel %vm100_vm0, %v113_v62, %v1410_v0  ;;  %v1334_v62 = vld [vmem:[%s1935_s3 + $0x24] sm:$0xf0]  ;;  %v1199_v63 = vld [vmem:[%s1935_s3 + $0x140] sm:$0xf] }
  0x8e   :  { %v200_v6 = vpack.c.bf16 %v197_v5, %v196_v4  ;;  %v1056_v0 = vor.u32 %v1334_v62, %v1055_v61  ;;  %v1370_v1 = vld [vmem:[%s1935_s3 + $0x144] sm:$0xf0]  ;;  %v1057_v4 = vld [vmem:[%s1935_s3 + $0x28] sm:$0xf0]  ;;  %v1367_v61 = vld [vmem:[%s1935_s3 + $0x134] sm:$0xf] }
  0x8f   :  { %v1200_v5 = vor.u32 %v1370_v1, %v1199_v63  ;;  %v1193_v62 = vld [vmem:[%s1935_s3 + $0x138] sm:$0xf0]  ;;  %v1137_v1 = vld [vmem:[%s1935_s3 + $0xc8] sm:$0xf0] }
  0x90   :  { %318 = vmatmul.bf16.vlgmr.msra.gmra.mxu0 %v200_v6  ;;  %v1060_v6 = vor.u32 %v1333_v3, %v1057_v4  ;;  %687 = vmatpush.bf16.msra.mxu2 %v1056_v0  ;;  %v1353_v0 = vld [vmem:[%s1935_s3 + $0xc4] sm:$0xf]  ;;  %v1196_v3 = vor.u32 %v1367_v61, %v1193_v62  ;;  %v1379_v62 = vld [vmem:[%s1937_s5 + $0x10] sm:$0xff] }
  0x91   :  { %723 = vmatpush.bf16.msrb.mxu1 %v1200_v5  ;;  %v1140_v4 = vor.u32 %v1353_v0, %v1137_v1  ;;  %v1381_v61 = vld [vmem:[%s1937_s5 + $0x20] sm:$0xff]  ;;  %v1392_v1 = vld [vmem:[%s1937_s5 + $0x78] sm:$0xff] }
  0x92   :  { %v1413_v2 = vpop.permute.xlu0 %1412  ;;  %744 = vmatpush.bf16.msrb.mxu0 %v1060_v6  ;;  %v1365_v6 = vld [vmem:[%s1935_s3 + $0x124] sm:$0xf] }
  0x93   :  { %v1415_v9 = vunpack.i.h.bf16 %v1413_v2  ;;  %v1414_v10 = vunpack.i.l.bf16 %v1413_v2  ;;  %v1103_v2 = vld [vmem:[%s1935_s3 + $0x80] sm:$0xf] }
  0x94   :  { %v1377_v0 = vld [vmem:[%s1937_s5] sm:$0xff] }
  0x95   :  { %v198_v14 = vsel %vm100_vm0, %v142_v12, %v1414_v10  ;;  %v199_v15 = vsel %vm100_vm0, %v115_v11, %v1415_v9  ;;  %v1104_v9 = vor.u32 %v1346_v8, %v1103_v2  ;;  %v1047_v10 = vld [vmem:[%s1935_s3 + $0x10] sm:$0xf]  ;;  %v1332_v11 = vld [vmem:[%s1935_s3 + $0x14] sm:$0xf0]  ;;  %v1185_v2 = vld [vmem:[%s1935_s3 + $0x128] sm:$0xf0] }
  0x96   :  { %v202_v16 = vpack.c.bf16 %v199_v15, %v198_v14  ;;  %v1191_v12 = vld [vmem:[%s1935_s3 + $0x130] sm:$0xf]  ;;  %v1048_v14 = vor.u32 %v1332_v11, %v1047_v10  ;;  %v1368_v15 = vld [vmem:[%s1935_s3 + $0x134] sm:$0xf0]  ;;  %v1188_v8 = vor.u32 %v1365_v6, %v1185_v2  ;;  %v1351_v11 = vld [vmem:[%s1935_s3 + $0xb4] sm:$0xf] }
  0x97   :  { %708 = vmatpush.bf16.msra.mxu3 %v1104_v9  ;;  %v1192_v18 = vor.u32 %v1368_v15, %v1191_v12  ;;  %v338_v49 = vpop.f32.mrf.mxu1  ;;  %v1129_v12 = vld [vmem:[%s1935_s3 + $0xb8] sm:$0xf0]  ;;  %v1389_v6 = vld [vmem:[%s1937_s5 + $0x60] sm:$0xff] }
  0x98   :  { %688 = vmatpush.bf16.msra.mxu2 %v1048_v14  ;;  %v1132_v15 = vor.u32 %v1351_v11, %v1129_v12  ;;  %v436_v2 = vld [vmem:[%s1936_s4] sm:$0x3]  ;;  %v1388_v11 = vld [vmem:[%s1937_s5 + $0x58] sm:$0xff] }
  0x99   :  { %724 = vmatpush.bf16.msrb.mxu1 %v1192_v18 }
  0x9b   :  { %777 = vmatpush.bf16.msrb.mxu3 %v1228_v22 }
  0x9c   :  { %689 = vmatpush.bf16.msra.mxu2 %v1040_v26  ;;  %v1172_v26 = vor.u32 %v1361_v24, %v1169_v25  ;;  %v1385_v24 = vld [vmem:[%s1937_s5 + $0x40] sm:$0xff] }
  0x9d   :  { %725 = vmatpush.bf16.msrb.mxu1 %v1184_v30  ;;  %v1113_v30 = vld [vmem:[%s1935_s3 + $0x98] sm:$0xf0] }
  0x9e   :  { %v1116_v33 = vor.u32 %v1347_v29, %v1113_v30 }
  0x9f   :  { %778 = vmatpush.bf16.msrb.mxu3 %v1220_v35  ;;  %v340_v10 = vpop.f32.mrf.mxu1 }
  0xa0   :  { %323 = vmatmul.bf16.gmra.mxu0 %v202_v16  ;;  %v1331_v16 = vld [vmem:[%s1935_s3 + $0x14] sm:$0xf]  ;;  %758 = vmatpush.bf16.msrb.mxu2 %v1164_v38  ;;  %v1108_v38 = vor.u32 %v1345_v36, %v1105_v37 }
  0xa1   :  { %v1052_v19 = vor.u32 %v1331_v16, %v1049_v17  ;;  %726 = vmatpush.bf16.msrb.mxu1 %v1176_v42  ;;  %v1363_v16 = vld [vmem:[%s1935_s3 + $0x114] sm:$0xf]  ;;  %v1177_v17 = vld [vmem:[%s1935_s3 + $0x118] sm:$0xf0] }
  0xa2   :  { %v1180_v21 = vor.u32 %v1363_v16, %v1177_v17 }
  0xa3   :  { %745 = vmatpush.bf16.msrb.mxu0 %v1052_v19  ;;  %779 = vmatpush.bf16.msrb.mxu3 %v1212_v45  ;;  %v1349_v19 = vld [vmem:[%s1935_s3 + $0xa4] sm:$0xf] }
  0xa4   :  { %759 = vmatpush.bf16.msrb.mxu2 %v1156_v50  ;;  %v1124_v22 = vor.u32 %v1349_v19, %v1121_v20  ;;  %v1386_v19 = vld [vmem:[%s1937_s5 + $0x48] sm:$0xff] }
  0xa5   :  { %727 = vmatpush.bf16.msrb.mxu1 %v1168_v55 }
  0xa7   :  { %746 = vmatpush.bf16.msrb.mxu0 %v1044_v31  ;;  %780 = vmatpush.bf16.msrb.mxu3 %v1204_v56  ;;  %v343_v31 = vpop.f32.mrf.mxu1 }
  0xa8   :  { %760 = vmatpush.bf16.msrb.mxu2 %v1148_v60  ;;  %v1382_v60 = vld [vmem:[%s1937_s5 + $0x28] sm:$0xff] }
  0xa9   :  { %940 = vmatpush.bf16.msra.mxu1 %v1384_v13 }
  0xab   :  { %781 = vmatpush.bf16.msrb.mxu3 %v1196_v3  ;;  %959 = vmatpush.bf16.msra.mxu0 %v1392_v1  ;;  %v1391_v3 = vld [vmem:[%s1937_s5 + $0x70] sm:$0xff] }
  0xac   :  { %761 = vmatpush.bf16.msrb.mxu2 %v1140_v4 }
  0xad   :  { %941 = vmatpush.bf16.msra.mxu1 %v1383_v57 }
  0xaf   :  { %782 = vmatpush.bf16.msrb.mxu3 %v1188_v8  ;;  %v345_v47 = vpop.f32.mrf.mxu1  ;;  %960 = vmatpush.bf16.msra.mxu0 %v1391_v3  ;;  %v438_v8 = vperm.slane %v436_v2, 0 }
  0xb0   :  { %762 = vmatpush.bf16.msrb.mxu2 %v1132_v15  ;;  %v1387_v15 = vld [vmem:[%s1937_s5 + $0x50] sm:$0xff] }
  0xb1   :  { %942 = vmatpush.bf16.msra.mxu1 %v1382_v60 }
  0xb3   :  { %783 = vmatpush.bf16.msrb.mxu3 %v1180_v21 }
  0xb4   :  { %763 = vmatpush.bf16.msrb.mxu2 %v1124_v22 }
  0xb5   :  { %943 = vmatpush.bf16.msra.mxu1 %v1381_v61 }
  0xb7   :  { %784 = vmatpush.bf16.msrb.mxu3 %v1172_v26 }
  0xb8   :  { %764 = vmatpush.bf16.msrb.mxu2 %v1116_v33 }
  0xb9   :  { %944 = vmatpush.bf16.msra.mxu1 %v1380_v34 }
  0xbc   :  { %765 = vmatpush.bf16.msrb.mxu2 %v1108_v38 }
  0xbd   :  { %945 = vmatpush.bf16.msra.mxu1 %v1379_v62 }
 0x10d   :  { %v319_v59 = vpop.f32.mrf.mxu0 }
 0x10e   :  { %v320_v63 = vadd.f32 %v1780_v54, %v319_v59 }
 0x110   :  { %v339_v5 = vadd.f32 %v338_v49, %v320_v63  ;;  %v1378_v63 = vld [vmem:[%s1937_s5 + $0x8] sm:$0xff] }
 0x111   :  { %946 = vmatpush.bf16.msra.mxu1 %v1378_v63 }
 0x112   :  { %v348_v9 = vmax.f32 %v339_v5, 0.0  ;;  %v1390_v5 = vld [vmem:[%s1937_s5 + $0x68] sm:$0xff] }
 0x113   :  { %961 = vmatpush.bf16.msra.mxu0 %v1390_v5 }
 0x114   :  { %358 = vst [vmem:[#allocation3 + $0x8] sm:$0xff] %v348_v9 }
 0x115   :  { %v321_v14 = vpop.f32.mrf.mxu0  ;;  %947 = vmatpush.bf16.msra.mxu1 %v1377_v0 }
 0x116   :  { %v322_v18 = vadd.f32 %v1780_v54, %v321_v14 }
 0x117   :  { %962 = vmatpush.bf16.msra.mxu0 %v1389_v6 }
 0x118   :  { %v341_v23 = vadd.f32 %v340_v10, %v322_v18 }
 0x11a   :  { %v349_v27 = vmax.f32 %v341_v23, 0.0 }
 0x11b   :  { %v362_v42 = vld [vmem:[#allocation3 + $0x7] sm:$0xff]  ;;  %963 = vmatpush.bf16.msra.mxu0 %v1388_v11 }
 0x11c   :  { %359 = vst [vmem:[#allocation3 + $0x10] sm:$0xff] %v349_v27  ;;  %v383_v28 = vpack.c.bf16 %v349_v27, %v348_v9 }
 0x11d   :  { %v324_v32 = vpop.f32.mrf.mxu0 }
 0x11e   :  { %v325_v35 = vadd.f32 %v1780_v54, %v324_v32  ;;  %709 = vmatmul.bf16.vlgmr.msra.gmra.mxu3 %v383_v28 }
 0x11f   :  { %964 = vmatpush.bf16.msra.mxu0 %v1387_v15 }
 0x120   :  { %v344_v39 = vadd.f32 %v343_v31, %v325_v35 }
 0x122   :  { %v350_v41 = vmax.f32 %v344_v39, 0.0 }
 0x123   :  { %v363_v43 = vld [vmem:[#allocation3 + $0xf] sm:$0xff]  ;;  %965 = vmatpush.bf16.msra.mxu0 %v1386_v19 }
 0x124   :  { %360 = vst [vmem:[#allocation3 + $0x18] sm:$0xff] %v350_v41  ;;  %v1230_v44 = vpack.c.bf16 %v363_v43, %v362_v42  ;;  %v374_v50 = vld [vmem:[#allocation3 + $0x9] sm:$0xff] }
 0x125   :  { %v326_v45 = vpop.f32.mrf.mxu0 }
 0x126   :  { %v327_v46 = vadd.f32 %v1780_v54, %v326_v45  ;;  %1231 = vmatmul.msk.bf16.vlgmr.msra.gmra.mxu2 %vm1229_vm7, %v1230_v44  ;;  %1243 = vmatmul.msk.bf16.vlgmr.msrb.gmra.mxu0 %vm1229_vm7, %v1230_v44  ;;  %v439_v44 = vperm.slane %v436_v2, 1 }
 0x127   :  { %1393 = vmatpush.bf16.msra.mxu2 %v1392_v1  ;;  %966 = vmatpush.bf16.msra.mxu0 %v1385_v24 }
 0x128   :  { %v346_v48 = vadd.f32 %v345_v47, %v327_v46 }
 0x12a   :  { %v351_v49 = vmax.f32 %v346_v48, 0.0 }
 0x12b   :  { %v375_v51 = vld [vmem:[#allocation3 + $0x11] sm:$0xff]  ;;  %1394 = vmatpush.bf16.msra.mxu2 %v1391_v3 }
 0x12c   :  { %361 = vst [vmem:[#allocation3 + $0x20] sm:$0xff] %v351_v49  ;;  %v1236_v52 = vpack.c.bf16 %v375_v51, %v374_v50  ;;  %v386_v53 = vpack.c.bf16 %v351_v49, %v350_v41  ;;  %v364_v54 = vld [vmem:[#allocation3 + $0x17] sm:$0xff] }
 0x12e   :  { %1237 = vmatmul.msk.bf16.vlgmr.msrb.gmra.mxu1 %vm1852_vm8, %v1236_v52  ;;  %714 = vmatmul.bf16.gmra.mxu3 %v386_v53 }
 0x12f   :  { %1395 = vmatpush.bf16.msra.mxu2 %v1390_v5 }
 0x133   :  { %v365_v55 = vld [vmem:[#allocation3 + $0x1f] sm:$0xff]  ;;  %1396 = vmatpush.bf16.msra.mxu2 %v1389_v6 }
 0x134   :  { %v1233_v56 = vpack.c.bf16 %v365_v55, %v364_v54  ;;  %v376_v58 = vld [vmem:[#allocation3 + $0x19] sm:$0xff]  ;;  %v377_v59 = vld [vmem:[#allocation3 + $0x21] sm:$0xff] }
 0x135   :  { %v1239_v7 = vpack.c.bf16 %v377_v59, %v376_v58 }
 0x136   :  { %1234 = vmatmul.msk.bf16.gmra.mxu2 %vm1232_vm9, %v1233_v56  ;;  %1246 = vmatmul.msk.bf16.gmra.mxu0 %vm1232_vm9, %v1233_v56 }
 0x137   :  { %1397 = vmatpush.bf16.msra.mxu2 %v1388_v11 }
 0x13b   :  { %1398 = vmatpush.bf16.msra.mxu2 %v1387_v15 }
 0x13e   :  { %1240 = vmatmul.msk.bf16.gmra.mxu1 %vm1238_vm10, %v1239_v7  ;;  %1249 = vmatmul.msk.bf16.vlgmr.msrb.gmra.mxu3 %vm1852_vm8, %v1236_v52 }
 0x13f   :  { %1399 = vmatpush.bf16.msra.mxu2 %v1386_v19 }
 0x143   :  { %1400 = vmatpush.bf16.msra.mxu2 %v1385_v24 }
 0x146   :  { %766 = vmatmul.bf16.vlgmr.msrb.gmra.mxu2 %v383_v28 }
 0x14e   :  { %1252 = vmatmul.msk.bf16.gmra.mxu3 %vm1238_vm10, %v1239_v7 }
 0x156   :  { %771 = vmatmul.bf16.gmra.mxu2 %v386_v53 }
 0x1a1   :  { %v710_v4 = vpop.f32.mrf.mxu3 }
 0x1a3   :  { %v748_v33 = vpop.f32.mrf.mxu0 }
 0x1a4   :  { %v749_v50 = vadd.f32 %v748_v33, %v439_v44 }
 0x1a9   :  { %v691_v9 = vpop.f32.mrf.mxu2  ;;  %v712_v10 = vpop.f32.mrf.mxu3 }
 0x1aa   :  { %v692_v14 = vadd.f32 %v691_v9, %v438_v8 }
 0x1ab   :  { %v729_v12 = vpop.f32.mrf.mxu1  ;;  %v750_v47 = vpop.f32.mrf.mxu0 }
 0x1ac   :  { %v711_v16 = vadd.f32 %v710_v4, %v692_v14  ;;  %v751_v52 = vadd.f32 %v750_v47, %v439_v44 }
 0x1ae   :  { %v730_v22 = vadd.f32 %v729_v12, %v711_v16 }
 0x1b0   :  { %v796_v26 = vmax.f32 %v730_v22, 0.0 }
 0x1b1   :  { %v693_v17 = vpop.f32.mrf.mxu2  ;;  %v715_v18 = vpop.f32.mrf.mxu3 }
 0x1b2   :  { %v694_v20 = vadd.f32 %v693_v17, %v438_v8 }
 0x1b3   :  { %v731_v21 = vpop.f32.mrf.mxu1  ;;  %v753_v56 = vpop.f32.mrf.mxu0 }
 0x1b4   :  { %v713_v23 = vadd.f32 %v712_v10, %v694_v20  ;;  %v754_v61 = vadd.f32 %v753_v56, %v439_v44  ;;  %v1417_v10 = vld [vmem:[%s1938_s6] ss:$0 sm:$0xff] }
 0x1b6   :  { %v732_v25 = vadd.f32 %v731_v21, %v713_v23 }
 0x1b8   :  { %v798_v27 = vmax.f32 %v732_v25, 0.0 }
 0x1b9   :  { %v696_v28 = vpop.f32.mrf.mxu2  ;;  %v717_v31 = vpop.f32.mrf.mxu3 }
 0x1ba   :  { %v804_v29 = vpack.c.bf16 %v798_v27, %v796_v26  ;;  %v697_v32 = vadd.f32 %v696_v28, %v438_v8 }
 0x1bb   :  { %v734_v30 = vpop.f32.mrf.mxu1  ;;  %v755_v34 = vpop.f32.mrf.mxu0 }
 0x1bc   :  { %948 = vmatmul.bf16.vlgmr.msra.gmra.mxu1 %v804_v29  ;;  %v716_v35 = vadd.f32 %v715_v18, %v697_v32  ;;  %v756_v63 = vadd.f32 %v755_v34, %v439_v44 }
 0x1be   :  { %v735_v38 = vadd.f32 %v734_v30, %v716_v35 }
 0x1c0   :  { %v800_v45 = vmax.f32 %v735_v38, 0.0 }
 0x1c1   :  { %v698_v36 = vpop.f32.mrf.mxu2  ;;  %v786_v42 = vpop.f32.mrf.mxu3 }
 0x1c2   :  { %v699_v37 = vadd.f32 %v698_v36, %v438_v8 }
 0x1c3   :  { %v736_v41 = vpop.f32.mrf.mxu1 }
 0x1c4   :  { %v718_v39 = vadd.f32 %v717_v31, %v699_v37 }
 0x1c6   :  { %v737_v43 = vadd.f32 %v736_v41, %v718_v39 }
 0x1c8   :  { %v802_v46 = vmax.f32 %v737_v43, 0.0 }
 0x1c9   :  { %v767_v48 = vpop.f32.mrf.mxu2  ;;  %v788_v40 = vpop.f32.mrf.mxu3 }
 0x1ca   :  { %v806_v49 = vpack.c.bf16 %v802_v46, %v800_v45  ;;  %v768_v51 = vadd.f32 %v767_v48, %v749_v50 }
 0x1cc   :  { %953 = vmatmul.bf16.gmra.mxu1 %v806_v49  ;;  %v787_v54 = vadd.f32 %v786_v42, %v768_v51 }
 0x1ce   :  { %v797_v57 = vmax.f32 %v787_v54, 0.0 }
 0x1d1   :  { %v769_v53 = vpop.f32.mrf.mxu2  ;;  %v791_v60 = vpop.f32.mrf.mxu3 }
 0x1d2   :  { %v770_v55 = vadd.f32 %v769_v53, %v751_v52 }
 0x1d4   :  { %v789_v13 = vadd.f32 %v788_v40, %v770_v55 }
 0x1d6   :  { %v799_v58 = vmax.f32 %v789_v13, 0.0 }
 0x1d8   :  { %v805_v59 = vpack.c.bf16 %v799_v58, %v797_v57 }
 0x1d9   :  { %v772_v7 = vpop.f32.mrf.mxu2  ;;  %v793_v4 = vpop.f32.mrf.mxu3 }
 0x1da   :  { %967 = vmatmul.bf16.vlgmr.msra.gmra.mxu0 %v805_v59  ;;  %v773_v62 = vadd.f32 %v772_v7, %v754_v61 }
 0x1dc   :  { %v792_v1 = vadd.f32 %v791_v60, %v773_v62 }
 0x1de   :  { %v801_v6 = vmax.f32 %v792_v1, 0.0 }
 0x1e1   :  { %v774_v0 = vpop.f32.mrf.mxu2 }
 0x1e2   :  { %v775_v3 = vadd.f32 %v774_v0, %v756_v63 }
 0x1e4   :  { %v794_v5 = vadd.f32 %v793_v4, %v775_v3 }
 0x1e6   :  { %v803_v2 = vmax.f32 %v794_v5, 0.0 }
 0x1e8   :  { %v807_v8 = vpack.c.bf16 %v803_v2, %v801_v6 }
 0x1ea   :  { %972 = vmatmul.bf16.vlgmr.msra.gmra.mxu2 %v807_v8 }
 0x239   :  { %v949_v9 = vpop.f32.mrf.mxu1 }
 0x23a   :  { %v950_v11 = vadd.f32 %v1417_v10, %v949_v9 }
 0x241   :  { %v951_v15 = vpop.f32.mrf.mxu1 }
 0x242   :  { %v952_v16 = vadd.f32 %v1417_v10, %v951_v15 }
 0x249   :  { %v954_v19 = vpop.f32.mrf.mxu1 }
 0x24a   :  { %v955_v20 = vadd.f32 %v1417_v10, %v954_v19 }
 0x251   :  { %v956_v23 = vpop.f32.mrf.mxu1 }
 0x252   :  { %v957_v24 = vadd.f32 %v1417_v10, %v956_v23 }
 0x257   :  { %v968_v12 = vpop.f32.mrf.mxu0 }
 0x258   :  { %v969_v14 = vadd.f32 %v968_v12, %v950_v11 }
 0x25a   :  { %978 = vst [vmem:[%s1939_s7] sm:$0xff] %v969_v14 }
 0x25f   :  { %v970_v17 = vpop.f32.mrf.mxu0 }
 0x260   :  { %v971_v18 = vadd.f32 %v970_v17, %v952_v16 }
 0x262   :  { %979 = vst [vmem:[%s1939_s7 + $0x8] sm:$0xff] %v971_v18 }
 0x26d   :  { %v973_v21 = vpop.f32.mrf.mxu2 }
 0x26e   :  { %v974_v22 = vadd.f32 %v973_v21, %v955_v20 }
 0x270   :  { %980 = vst [vmem:[%s1939_s7 + $0x10] sm:$0xff] %v974_v22 }
 0x275   :  { %v975_v25 = vpop.f32.mrf.mxu2 }
 0x276   :  { %v976_v26 = vadd.f32 %v975_v25, %v957_v24 }
 0x278   :  { %981 = vst [vmem:[%s1939_s7 + $0x18] sm:$0xff] %v976_v26 }
 0x279   :  { %986 = vsyncpa [#allocation5], 1 }

</bundles_post_ra>
